<compile_context>
chip_gen: v5e
topology: v5e:2x2
jax: 0.10.0
libtpu: 0.0.40
codegen_flags: <defaults>
</compile_context>

<pallas_src>
import math
import functools

import jax
import jax.numpy as jnp
from jax.experimental import pallas as pl
from jax.experimental.pallas import tpu as pltpu


_VMEM_BUDGET_BYTES = 8 * 1024 * 1024  # double-buffered in+out per grid step


def _round_up(v, m):
    return ((v + m - 1) // m) * m


def _pick_tile_rows(total_rows, bytes_per_row_buffered):
    """Largest multiple-of-8 row tile under the VMEM budget, kept small enough
    that the grid has >= 2 'parallel' steps (v7x megacore) when possible."""
    if total_rows <= 8:
        return total_rows  # single full-extent block (allowed: equals array dim)
    cap = max(8, _VMEM_BUDGET_BYTES // max(bytes_per_row_buffered, 1))
    two_step = max(8, _round_up(pl.cdiv(total_rows, 2), 8))
    t = max(8, min(cap, two_step))
    return (t // 8) * 8


def _row_kernel(x_ref, fs_ref, ph_ref, out_ref):
    # x_ref: (TB, 1), fs_ref/ph_ref: (1, dim), out_ref: (TB, dim)
    # out[b, d] = sin(x[b] * fs[d] + ph[d]);  the cos half is encoded via
    # ph[d] = pi/2 (cos(a) == sin(a + pi/2)).  Single dense store.
    out_ref[...] = jnp.sin(x_ref[...] * fs_ref[...] + ph_ref[...])


def _slab_kernel(x_ref, e_ref, fs_ref, ph_ref, out_ref, *, r):
    # Lane-dense slab path (dim < 128).  One slab row packs r = 128/dim batch
    # rows.  x_ref: (TS, r); e_ref: (r, 128) one-hot expansion, e[i, j] = 1 iff
    # j // dim == i; fs_ref/ph_ref: (1, 128) lane-tiled tables; out: (TS, 128).
    xe = x_ref[:, 0:1] * e_ref[0:1, :]
    for i in range(1, r):                      # static unroll, pure VPU broadcasts
        xe = xe + x_ref[:, i:i + 1] * e_ref[i:i + 1, :]
    out_ref[...] = jnp.sin(xe * fs_ref[...] + ph_ref[...])


def sinusoidal_pos_emb(x, dim, num_steps, rescale_steps=4000.0):
    """Pallas TPU implementation of SinusoidalPosEmb.forward.

    x: (B,) array of timesteps. Returns (B, dim) float32 embeddings.
    """
    assert dim % 2 == 0 and dim >= 4, "dim must be even and >= 4 (half_dim > 1)"
    half_dim = dim // 2
    b = x.shape[0]
    scale = float(rescale_steps) / float(num_steps)

    # Frequency / phase tables hoisted out of the kernel (one exp per column,
    # not per element); the rescale factor is folded into the frequencies.
    coef = math.log(10000.0) / (half_dim - 1)
    freqs = jnp.exp(jnp.arange(half_dim, dtype=jnp.float32) * -coef)
    fs_full = jnp.concatenate([freqs, freqs]) * jnp.float32(scale)          # (dim,)
    ph_full = jnp.concatenate([jnp.zeros((half_dim,), jnp.float32),
                               jnp.full((half_dim,), 0.5 * math.pi,
                                        jnp.float32)])                      # (dim,)

    xf = x.astype(jnp.float32)

    use_slab = (dim < 128) and (128 % dim == 0) and ((b * dim) % 128 == 0)
    if use_slab:
        r = 128 // dim
        n_rows = b // r
        x_slab = xf.reshape(n_rows, r)                       # free reshape
        fs_t = jnp.tile(fs_full, r).reshape(1, 128)          # fs_t[j] = fs[j % dim]
        ph_t = jnp.tile(ph_full, r).reshape(1, 128)
        lane = jnp.arange(128, dtype=jnp.int32) // dim
        e_mat = (lane[None, :] == jnp.arange(r, dtype=jnp.int32)[:, None]
                 ).astype(jnp.float32)                       # (r, 128) one-hot

        ts = _pick_tile_rows(n_rows, 2 * (512 + 512))        # in lane-padded + out
        out_slab = pl.pallas_call(
            functools.partial(_slab_kernel, r=r),
            out_shape=jax.ShapeDtypeStruct((n_rows, 128), jnp.float32),
            grid=(pl.cdiv(n_rows, ts),),
            in_specs=[
                pl.BlockSpec((ts, r), lambda i: (i, 0)),
                pl.BlockSpec((r, 128), lambda i: (0, 0)),
                pl.BlockSpec((1, 128), lambda i: (0, 0)),
                pl.BlockSpec((1, 128), lambda i: (0, 0)),
            ],
            out_specs=pl.BlockSpec((ts, 128), lambda i: (i, 0)),
            compiler_params=pltpu.CompilerParams(
                dimension_semantics=("parallel",)),
            cost_estimate=pl.CostEstimate(
                flops=(2 * r + 2) * n_rows * 128,
                transcendentals=n_rows * 128,
                bytes_accessed=4 * (b + (r + 2) * 128 + n_rows * 128),
            ),
        )(x_slab, e_mat, fs_t, ph_t)
        # Contiguous row-major reshape back to (B, dim): no copy.
        return out_slab.reshape(b, dim)

    # General path: output rows stored directly (fully unmasked when
    # dim % 128 == 0; for other dims still a single store per vreg).
    x2d = xf.reshape(b, 1)
    fs_2d = fs_full.reshape(1, dim)
    ph_2d = ph_full.reshape(1, dim)
    # (tb, 1) input is lane-padded to 128 lanes in VMEM -> 512 B/row; budget it.
    tb = _pick_tile_rows(b, 2 * (512 + 4 * dim))
    out = pl.pallas_call(
        _row_kernel,
        out_shape=jax.ShapeDtypeStruct((b, dim), jnp.float32),
        grid=(pl.cdiv(b, tb),),
        in_specs=[
            pl.BlockSpec((tb, 1), lambda i: (i, 0)),
            pl.BlockSpec((1, dim), lambda i: (0, 0)),
            pl.BlockSpec((1, dim), lambda i: (0, 0)),
        ],
        out_specs=pl.BlockSpec((tb, dim), lambda i: (i, 0)),
        compiler_params=pltpu.CompilerParams(
            dimension_semantics=("parallel",)),
        cost_estimate=pl.CostEstimate(
            flops=2 * b * dim,
            transcendentals=b * dim,
            bytes_accessed=4 * (b + 2 * dim + b * dim),
        ),
    )(x2d, fs_2d, ph_2d)
    return out


def _reference(x, dim, num_steps, rescale_steps=4000.0):
    # Faithful port of the PyTorch forward (same op order as torch code).
    xs = x.astype(jnp.float32) / float(num_steps) * float(rescale_steps)
    half_dim = dim // 2
    coef = math.log(10000.0) / (half_dim - 1)
    freqs = jnp.exp(jnp.arange(half_dim, dtype=jnp.float32) * -coef)
    emb = xs[:, None] * freqs[None, :]
    return jnp.concatenate([jnp.sin(emb), jnp.cos(emb)], axis=-1)


def _tolerance(x, dim, num_steps, rescale_steps):
    # sin/cos arguments reach |a| ~ rescale_steps (4000 rad).  In f32 the
    # result is only determined to ~|a|*eps by rounding of the argument, and
    # Mosaic vs XLA transcendental lowerings (plus the sin(a+pi/2)==cos(a)
    # identity and the folded rescale constant) differ by a few ULP of the
    # angle, so the achievable agreement scales with |a|.  Angle-proportional
    # tolerance with a tight floor: low-frequency columns must match closely.
    half = dim // 2
    coef = math.log(10000.0) / (half - 1)
    freqs = jnp.exp(jnp.arange(half, dtype=jnp.float32) * -coef)
    ang = jnp.abs((x.astype(jnp.float32) / num_steps * rescale_steps)[:, None]
                  * freqs[None, :])
    ang = jnp.concatenate([ang, ang], axis=-1)
    return 2e-4 + 3e-6 * ang


if __name__ == "__main__":
    key = jax.random.PRNGKey(0)
    NUM_STEPS, RESCALE = 1000, 4000.0

    def check(b, dim):
        kx = jax.random.fold_in(key, b * 1000 + dim)
        x = jax.random.uniform(kx, (b,), dtype=jnp.float32,
                               minval=0.0, maxval=float(NUM_STEPS))
        out = jax.block_until_ready(sinusoidal_pos_emb(x, dim, NUM_STEPS, RESCALE))
        ref = _reference(x, dim, NUM_STEPS, RESCALE)
        assert out.shape == (b, dim)
        err = jnp.abs(out - ref)
        tol = _tolerance(x, dim, NUM_STEPS, RESCALE)
        assert bool(jnp.all(err <= tol)), (
            f"B={b} dim={dim}: max abs err {float(jnp.max(err)):.3e}")

    check(8, 32)    # lane-dense slab path (dim divides 128)
    check(40, 32)   # slab path with a ragged last grid block
    check(20, 48)   # general row path, ragged last block (no pad / no slice)
    print("KERNEL_OK")
</pallas_src>

<mosaic_0001>
module attributes {stable_mosaic.version = 11 : i64} {
  func.func @_slab_kernel(%arg0: i32, %arg1: memref<2x4xf32, #tpu.memory_space<vmem>>, %arg2: memref<4x128xf32, #tpu.memory_space<vmem>>, %arg3: memref<1x128xf32, #tpu.memory_space<vmem>>, %arg4: memref<1x128xf32, #tpu.memory_space<vmem>>, %arg5: memref<2x128xf32, #tpu.memory_space<vmem>>) attributes {dimension_semantics = [#tpu.dimension_semantics<parallel>], iteration_bounds = array<i64: 1>, scalar_prefetch = 0 : i64, scratch_operands = 0 : i64, tpu.core_type = #tpu.core_type<tc>, window_params = [{transform_indices = @transform_0, window_bounds = array<i64: 2, 4>}, {pipeline_mode = #tpu.pipeline_mode<synchronous>, transform_indices = @transform_1, window_bounds = array<i64: 4, 128>}, {pipeline_mode = #tpu.pipeline_mode<synchronous>, transform_indices = @transform_2, window_bounds = array<i64: 1, 128>}, {pipeline_mode = #tpu.pipeline_mode<synchronous>, transform_indices = @transform_3, window_bounds = array<i64: 1, 128>}, {transform_indices = @transform_4, window_bounds = array<i64: 2, 128>}]} {
    %c0 = arith.constant 0 : index
    %c0_0 = arith.constant 0 : index
    %0 = vector.load %arg1[%c0, %c0_0] : memref<2x4xf32, #tpu.memory_space<vmem>>, vector<2x1xf32>
    %c0_1 = arith.constant 0 : index
    %c0_2 = arith.constant 0 : index
    %1 = vector.load %arg2[%c0_1, %c0_2] : memref<4x128xf32, #tpu.memory_space<vmem>>, vector<1x128xf32>
    %2 = vector.broadcast %0 : vector<2x1xf32> to vector<2x128xf32>
    %3 = vector.broadcast %1 : vector<1x128xf32> to vector<2x128xf32>
    %4 = arith.mulf %2, %3 : vector<2x128xf32>
    %c0_3 = arith.constant 0 : index
    %c1 = arith.constant 1 : index
    %5 = vector.load %arg1[%c0_3, %c1] : memref<2x4xf32, #tpu.memory_space<vmem>>, vector<2x1xf32>
    %c1_4 = arith.constant 1 : index
    %c0_5 = arith.constant 0 : index
    %6 = vector.load %arg2[%c1_4, %c0_5] : memref<4x128xf32, #tpu.memory_space<vmem>>, vector<1x128xf32>
    %7 = vector.broadcast %5 : vector<2x1xf32> to vector<2x128xf32>
    %8 = vector.broadcast %6 : vector<1x128xf32> to vector<2x128xf32>
    %9 = arith.mulf %7, %8 : vector<2x128xf32>
    %10 = arith.addf %4, %9 : vector<2x128xf32>
    %c0_6 = arith.constant 0 : index
    %c2 = arith.constant 2 : index
    %11 = vector.load %arg1[%c0_6, %c2] : memref<2x4xf32, #tpu.memory_space<vmem>>, vector<2x1xf32>
    %c2_7 = arith.constant 2 : index
    %c0_8 = arith.constant 0 : index
    %12 = vector.load %arg2[%c2_7, %c0_8] : memref<4x128xf32, #tpu.memory_space<vmem>>, vector<1x128xf32>
    %13 = vector.broadcast %11 : vector<2x1xf32> to vector<2x128xf32>
    %14 = vector.broadcast %12 : vector<1x128xf32> to vector<2x128xf32>
    %15 = arith.mulf %13, %14 : vector<2x128xf32>
    %16 = arith.addf %10, %15 : vector<2x128xf32>
    %c0_9 = arith.constant 0 : index
    %c3 = arith.constant 3 : index
    %17 = vector.load %arg1[%c0_9, %c3] : memref<2x4xf32, #tpu.memory_space<vmem>>, vector<2x1xf32>
    %c3_10 = arith.constant 3 : index
    %c0_11 = arith.constant 0 : index
    %18 = vector.load %arg2[%c3_10, %c0_11] : memref<4x128xf32, #tpu.memory_space<vmem>>, vector<1x128xf32>
    %19 = vector.broadcast %17 : vector<2x1xf32> to vector<2x128xf32>
    %20 = vector.broadcast %18 : vector<1x128xf32> to vector<2x128xf32>
    %21 = arith.mulf %19, %20 : vector<2x128xf32>
    %22 = arith.addf %16, %21 : vector<2x128xf32>
    %c0_12 = arith.constant 0 : index
    %c0_13 = arith.constant 0 : index
    %23 = vector.load %arg3[%c0_12, %c0_13] : memref<1x128xf32, #tpu.memory_space<vmem>>, vector<1x128xf32>
    %24 = vector.broadcast %23 : vector<1x128xf32> to vector<2x128xf32>
    %25 = arith.mulf %22, %24 : vector<2x128xf32>
    %c0_14 = arith.constant 0 : index
    %c0_15 = arith.constant 0 : index
    %26 = vector.load %arg4[%c0_14, %c0_15] : memref<1x128xf32, #tpu.memory_space<vmem>>, vector<1x128xf32>
    %27 = vector.broadcast %26 : vector<1x128xf32> to vector<2x128xf32>
    %28 = arith.addf %25, %27 : vector<2x128xf32>
    %29 = math.sin %28 : vector<2x128xf32>
    %c0_16 = arith.constant 0 : index
    %c0_17 = arith.constant 0 : index
    %30 = vector.load %arg5[%c0_16, %c0_17] : memref<2x128xf32, #tpu.memory_space<vmem>>, vector<2x128xf32>
    tpu.vector_store %arg5[%c0_16, %c0_17], %29 {strides = array<i32>} : memref<2x128xf32, #tpu.memory_space<vmem>>, vector<2x128xf32>,
    return
  }
  func.func @transform_0(%arg0: i32) -> (i32, i32) {
    %c0_i32 = arith.constant 0 : i32
    %c0_i32_0 = arith.constant 0 : i32
    return %arg0, %c0_i32 : i32, i32
  }
  func.func @transform_1(%arg0: i32) -> (i32, i32) {
    %c0_i32 = arith.constant 0 : i32
    %c0_i32_0 = arith.constant 0 : i32
    %c0_i32_1 = arith.constant 0 : i32
    return %c0_i32, %c0_i32_0 : i32, i32
  }
  func.func @transform_2(%arg0: i32) -> (i32, i32) {
    %c0_i32 = arith.constant 0 : i32
    %c0_i32_0 = arith.constant 0 : i32
    %c0_i32_1 = arith.constant 0 : i32
    return %c0_i32, %c0_i32_0 : i32, i32
  }
  func.func @transform_3(%arg0: i32) -> (i32, i32) {
    %c0_i32 = arith.constant 0 : i32
    %c0_i32_0 = arith.constant 0 : i32
    %c0_i32_1 = arith.constant 0 : i32
    return %c0_i32, %c0_i32_0 : i32, i32
  }
  func.func @transform_4(%arg0: i32) -> (i32, i32) {
    %c0_i32 = arith.constant 0 : i32
    %c0_i32_0 = arith.constant 0 : i32
    return %arg0, %c0_i32 : i32, i32
  }
}

</mosaic_0001>

<bundles_post_ra>
// kernel: tpu_custom_call.1
= control target key start
LH: loop header
LB: loop body
LE: loop exit
PB: predicated region body
PF: predicated region fallthrough
CT: control target
= control target key end

     0   :  { %9 = vsyncpa [#allocation3], 0  ;;  %s482_s0 = inlined_call_operand.hbm [shape: f32[2,4], index: 0, kind: input, shape index: {}]   ;;  %s483_s1 = inlined_call_operand.hbm [shape: f32[4,128], index: 1, kind: input, shape index: {}]   ;;  %s484_s2 = inlined_call_operand.vmem [shape: f32[1,128], index: 2, kind: input, shape index: {}]   ;;  %s485_s3 = inlined_call_operand.vmem [shape: f32[1,128], index: 3, kind: input, shape index: {}]   ;;  %s486_s4 = inlined_call_operand.hbm [shape: f32[2,128], index: 4, kind: output, shape index: {}]  }
   0x1   :  { %10 = vsyncpa [#allocation6], 0 }
   0x2   :  { %11 = vsyncpa [#allocation4], 0  ;;  %s17_s17 = sshll.u32 %s482_s0, 4  ;;  %s368_s18 = smov [#allocation2]   ;;  %s18_s17 = int_to_ptr.hbm [resolvable:$true] %s17_s17 }
   0x3   :  { %s19_s19 = sshll.u32 %s368_s18, 4  ;;  %s28_s22 = sshll.u32 %s483_s1, 4  ;;  %s20_s19 = int_to_ptr.vmem [resolvable:$true] %s19_s19  ;;  %s29_s22 = int_to_ptr.hbm [resolvable:$true] %s28_s22 }
   0x4   :  { %22 = dma.hbm_to_vmem [thread:$0]  %s18_s17, 32, %s20_s19, [#allocation3]  }
   0x5   :  { %s369_s23 = smov [#allocation5]  }
   0x6   :  { %s30_s24 = sshll.u32 %s369_s23, 4  ;;  %s31_s24 = int_to_ptr.vmem [resolvable:$true] %s30_s24 }
   0x7   :  { %33 = dma.hbm_to_vmem [thread:$0]  %s29_s22, 64, %s31_s24, [#allocation6]  }
   0x8   :  { %362 = dma.done.wait [#allocation3], 32  }
   0x9   :  { %363 = vsyncadd [#allocation3], 4294967264 }
   0xa   :  { %364 = dma.done.wait [#allocation6], 64  }
   0xb   :  { %365 = vsyncadd [#allocation6], 4294967232  ;;  %v370_v0 = vmov 0   ;;  %v371_v1 = vmov 2   ;;  %v46_v2 = vld [vmem:[#allocation2] sm:$0x3] }
   0xc   :  { %279 = vset.pattern.permute.xlu0 %v370_v0  ;;  %281 = vset.pattern.permute.xlu1 %v371_v1  ;;  %v372_v3 = vmov 1   ;;  %v373_v4 = vmov 3   ;;  %v284_v7 = vld [vmem:[#allocation5] ss:$0 sm:$0xff]  ;;  %v286_v8 = vld [vmem:[#allocation5 + $0x1] ss:$0 sm:$0xff] }
   0xd   :  { %50 = vperm.xlu0 %279, %v46_v2   ;;  %65 = vperm.xlu1 %281, %v46_v2   ;;  %v285_v9 = vld [vmem:[#allocation5 + $0x2] ss:$0 sm:$0xff]  ;;  %v287_v10 = vld [vmem:[#allocation5 + $0x3] ss:$0 sm:$0xff]  ;;  %v288_v18 = vld [vmem:[%s484_s2] ss:$0 sm:$0xff] }
   0xe   :  { %v289_v20 = vld [vmem:[%s485_s3] ss:$0 sm:$0xff]  ;;  %v374_v35 = vmov 683565275   ;;  %v375_v37 = vmov 2475754826  }
   0xf   :  { %v376_v40 = vmov 2131351028   ;;  %v377_v43 = vmov 2102212464   ;;  %v378_v46 = vmov 920167782  }
  0x10   :  { %v379_v49 = vmov 1326507024   ;;  %s380_s2 = smov [#allocation7]   ;;  %s252_s29 = sshll.u32 %s486_s4, 4  ;;  %s253_s29 = int_to_ptr.hbm [resolvable:$true] %s252_s29 }
  0x11   :  { %s250_s3 = sshll.u32 %s380_s2, 4  ;;  %s251_s3 = int_to_ptr.vmem [resolvable:$true] %s250_s3 }
  0x15   :  { %280 = vset.pattern.permute.xlu0 %v372_v3  ;;  %282 = vset.pattern.permute.xlu1 %v373_v4 }
  0x16   :  { %57 = vperm.xlu0 %280, %v46_v2   ;;  %73 = vperm.xlu1 %282, %v46_v2  }
  0x1e   :  { %283 = vset.pattern.permute.xlu0 %v373_v4 }
  0x7f   :  { %v51_v5 = vpop.permute.xlu0 %50  ;;  %v66_v6 = vpop.permute.xlu1 %65 }
  0x80   :  { %v54_v13 = vmul.f32 %v284_v7, %v51_v5  ;;  %v69_v15 = vmul.f32 %v285_v9, %v66_v6 }
  0x88   :  { %v58_v11 = vpop.permute.xlu0 %57  ;;  %v74_v12 = vpop.permute.xlu1 %73 }
  0x89   :  { %v61_v14 = vmul.f32 %v286_v8, %v58_v11  ;;  %v77_v17 = vmul.f32 %v287_v10, %v74_v12 }
  0x8b   :  { %v62_v16 = vadd.f32 %v61_v14, %v54_v13 }
  0x8d   :  { %v70_v19 = vadd.f32 %v69_v15, %v62_v16 }
  0x8f   :  { %v78_v21 = vadd.f32 %v77_v17, %v70_v19 }
  0x91   :  { %v83_v22 = vmul.f32 %v288_v18, %v78_v21 }
  0x93   :  { %v419_v23 = vadd.f32 %v289_v20, %v83_v22 }
  0x95   :  { %v92_v24 = vand.u32 2139095040, %v419_v23  ;;  %v89_v27 = vand.u32 2147483647, %v419_v23  ;;  %vm91_vm12 = vcmp.lt.s32.totalorder %v419_v23, 0 }
  0x97   :  { %v93_v25 = vshrl.u32 %v92_v24, 23  ;;  %v96_v30 = vand.u32 8388607, %v89_v27  ;;  %vm90_vm13 = vcmp.le.f32.partialorder %v89_v27, 0.7853982 }
  0x99   :  { %v263_v26 = vadd.s32 4294967169, %v93_v25  ;;  %v97_v34 = vor.u32 8388608, %v96_v30 }
  0x9b   :  { %v99_v28 = vadd.s32 1, %v263_v26  ;;  %v436_v56 = vshll.u32 %v97_v34, 8 }
  0x9d   :  { %vm100_vm0 = vcmp.gt.s32.totalorder %v99_v28, 0  ;;  %v138_v2 = vand.u32 65535, %v436_v56  ;;  %v139_v3 = vshrl.u32 %v436_v56, 16 }
  0x9e   :  { %v101_v29 = vsel %vm100_vm0, %v99_v28, 0 }
  0x9f   :  { %v103_v31 = vand.u32 31, %v101_v29  ;;  %v427_v33 = vshrl.u32 %v101_v29, 5 }
  0xa1   :  { %v425_v32 = vsub.s32 32, %v103_v31  ;;  %v106_v36 = vshll.u32 %v374_v35, %v103_v31  ;;  %v109_v38 = vshll.u32 %v375_v37, %v103_v31  ;;  %v112_v42 = vshll.u32 %v376_v40, %v103_v31 }
  0xa2   :  { %v115_v45 = vshll.u32 %v377_v43, %v103_v31  ;;  %v118_v48 = vshll.u32 %v378_v46, %v103_v31  ;;  %vm121_vm1 = vcmp.lt.s32.totalorder %v427_v33, 1  ;;  %vm124_vm2 = vcmp.lt.s32.totalorder %v427_v33, 4 }
  0xa3   :  { %v107_v39 = vshrl.u32 %v375_v37, %v425_v32  ;;  %v110_v41 = vshrl.u32 %v376_v40, %v425_v32  ;;  %v113_v44 = vshrl.u32 %v377_v43, %v425_v32  ;;  %v116_v47 = vshrl.u32 %v378_v46, %v425_v32 }
  0xa4   :  { %v119_v50 = vshrl.u32 %v379_v49, %v425_v32  ;;  %vm123_vm3 = vcmp.lt.s32.totalorder %v427_v33, 3  ;;  %vm122_vm4 = vcmp.lt.s32.totalorder %v427_v33, 2  ;;  %v105_v30 = vshrl.u32 %v374_v35, %v425_v32 }
  0xa5   :  { %v108_v51 = vor.u32 %v107_v39, %v106_v36  ;;  %v111_v52 = vor.u32 %v110_v41, %v109_v38  ;;  %v114_v53 = vor.u32 %v113_v44, %v112_v42  ;;  %v117_v54 = vor.u32 %v116_v47, %v115_v45 }
  0xa6   :  { %v120_v55 = vor.u32 %v119_v50, %v118_v48 }
  0xa7   :  { %v129_v57 = vsel %vm121_vm1, %v108_v51, %v111_v52  ;;  %v133_v58 = vsel %vm121_vm1, %v111_v52, %v114_v53  ;;  %v130_v59 = vsel %vm124_vm2, %v117_v54, 920167782  ;;  %v126_v26 = vsel %vm124_vm2, %v114_v53, 2102212464 }
  0xa8   :  { %v134_v60 = vsel %vm124_vm2, %v120_v55, 1326507024  ;;  %v131_v61 = vsel %vm123_vm3, %v114_v53, %v130_v59  ;;  %v125_v39 = vsel %vm121_vm1, %v105_v30, %v108_v51  ;;  %v127_v40 = vsel %vm123_vm3, %v111_v52, %v126_v26 }
  0xa9   :  { %v135_v62 = vsel %vm123_vm3, %v117_v54, %v134_v60  ;;  %v132_v63 = vsel %vm122_vm4, %v129_v57, %v131_v61  ;;  %v128_v32 = vsel %vm122_vm4, %v125_v39, %v127_v40  ;;  %vm232_vm1 = vweird.f32 %v419_v23 }
  0xaa   :  { %v136_v1 = vsel %vm122_vm4, %v133_v58, %v135_v62  ;;  %v162_v6 = vand.u32 65535, %v132_v63  ;;  %v163_v7 = vshrl.u32 %v132_v63, 16  ;;  %v182_v47 = vmul.u32 %v436_v56, %v128_v32 }
  0xab   :  { %v140_v4 = vand.u32 65535, %v136_v1  ;;  %v141_v5 = vshrl.u32 %v136_v1, 16 }
  0xac   :  { %v165_v10 = vmul.u32 %v163_v7, %v138_v2  ;;  %v166_v11 = vmul.u32 %v162_v6, %v139_v3  ;;  %v164_v15 = vmul.u32 %v162_v6, %v138_v2  ;;  %v167_v19 = vmul.u32 %v163_v7, %v139_v3 }
  0xad   :  { %v143_v8 = vmul.u32 %v141_v5, %v138_v2  ;;  %v144_v9 = vmul.u32 %v140_v4, %v139_v3  ;;  %v142_v12 = vmul.u32 %v140_v4, %v138_v2  ;;  %v145_v14 = vmul.u32 %v141_v5, %v139_v3 }
  0xae   :  { %v168_v16 = vshll.u32 %v165_v10, 16  ;;  %v170_v21 = vshll.u32 %v166_v11, 16  ;;  %v169_v37 = vshrl.u32 %v165_v10, 16  ;;  %v171_v43 = vshrl.u32 %v166_v11, 16 }
  0xaf   :  { %v146_v13 = vshll.u32 %v143_v8, 16  ;;  %v148_v17 = vshll.u32 %v144_v9, 16  ;;  %v147_v31 = vshrl.u32 %v143_v8, 16  ;;  %v149_v41 = vshrl.u32 %v144_v9, 16 }
  0xb0   :  { %vm172_vm6 = vc.u32 %v164_v15, %v168_v16  ;;  %v174_v22 = vadd.s32 %v168_v16, %v164_v15 }
  0xb1   :  { %vm150_vm5 = vc.u32 %v142_v12, %v146_v13  ;;  %v152_v18 = vadd.s32 %v146_v13, %v142_v12  ;;  %v173_v25 = vsel %vm172_vm6, 1, %v370_v0 }
  0xb2   :  { %v151_v20 = vsel %vm150_vm5, 1, %v370_v0  ;;  %v175_v29 = vadd.s32 %v173_v25, %v167_v19  ;;  %vm176_vm8 = vc.u32 %v174_v22, %v170_v21  ;;  %v178_v46 = vadd.s32 %v174_v22, %v170_v21 }
  0xb3   :  { %v153_v24 = vadd.s32 %v151_v20, %v145_v14  ;;  %vm154_vm7 = vc.u32 %v152_v18, %v148_v17  ;;  %v177_v36 = vsel %vm176_vm8, 1, %v370_v0 }
  0xb4   :  { %v155_v28 = vsel %vm154_vm7, 1, %v370_v0  ;;  %v179_v38 = vadd.s32 %v177_v36, %v175_v29 }
  0xb5   :  { %v157_v34 = vadd.s32 %v155_v28, %v153_v24 }
  0xb6   :  { %v180_v44 = vadd.s32 %v179_v38, %v169_v37 }
  0xb7   :  { %v158_v42 = vadd.s32 %v157_v34, %v147_v31 }
  0xb8   :  { %v181_v35 = vadd.s32 %v180_v44, %v171_v43 }
  0xb9   :  { %v159_v45 = vadd.s32 %v158_v42, %v149_v41 }
  0xba   :  { %v185_v0 = vadd.s32 1, %v181_v35 }
  0xbb   :  { %vm184_vm9 = vc.u32 %v159_v45, %v178_v46  ;;  %v183_v33 = vadd.s32 %v178_v46, %v159_v45 }
  0xbc   :  { %v186_v48 = vsel %vm184_vm9, %v185_v0, %v181_v35 }
  0xbd   :  { %v187_v49 = vadd.s32 %v186_v48, %v182_v47 }
  0xbf   :  { %v188_v50 = vadd.s32 536870912, %v187_v49 }
  0xc1   :  { %v189_v51 = vshrl.u32 %v188_v50, 30 }
  0xc3   :  { %v190_v53 = vshll.u32 %v189_v51, 30  ;;  %v213_v9 = vsub.s32 4, %v189_v51 }
  0xc5   :  { %v191_v52 = vsub.s32 %v187_v49, %v190_v53  ;;  %v214_v14 = vsel %vm91_vm12, %v213_v9, %v189_v51 }
  0xc6   :  { %v216_v17 = vsel %vm90_vm13, 0, %v214_v14 }
  0xc7   :  { %vm192_vm10 = vcmp.lt.s32.totalorder %v191_v52, 0  ;;  %v193_v54 = vsub.s32 0, %v191_v52  ;;  %v233_v22 = vadd.s32 3, %v216_v17 }
  0xc9   :  { %v194_v55 = vsel %vm192_vm10, %v193_v54, %v191_v52  ;;  %v234_v28 = vand.u32 3, %v233_v22 }
  0xca   :  { %v195_v57 = vclz %v194_v55 }
  0xcb   :  { %vm236_vm14 = vcmp.eq.s32.totalorder %v234_v28, 0  ;;  %vm239_vm15 = vcmp.eq.s32.totalorder %v234_v28, 2  ;;  %vm235_vm0 = vcmp.lt.s32.totalorder %v234_v28, 2 }
  0xcc   :  { %v264_v58 = vadd.s32 4294967294, %v195_v57 }
  0xce   :  { %vm265_vm11 = vcmp.lt.s32.totalorder %v264_v58, 0 }
  0xcf   :  { %v198_v59 = vsel %vm265_vm11, 0, %v264_v58 }
  0xd0   :  { %v199_v60 = vsub.s32 32, %v198_v59  ;;  %v203_v61 = vsub.s32 4294967266, %v198_v59  ;;  %v200_v62 = vshll.u32 %v191_v52, %v198_v59 }
  0xd2   :  { %v201_v63 = vshrl.u32 %v183_v33, %v199_v60  ;;  %v204_v1 = vadd.s32 127, %v203_v61 }
  0xd4   :  { %v202_v56 = vor.u32 %v201_v63, %v200_v62  ;;  %v205_v2 = vshll.u32 %v204_v1, 23 }
  0xd6   :  { %v206_v3 = vor.u32 4788187, %v205_v2  ;;  %v209_v5 = vcvt.s32.f32 %v202_v56 }
  0xd8   :  { %v207_v4 = vand.u32 2147483647, %v206_v3 }
  0xda   :  { %v210_v6 = vmul.f32 %v209_v5, %v207_v4 }
  0xdc   :  { %v211_v7 = vxor.u32 2147483648, %v210_v6 }
  0xde   :  { %v212_v8 = vsel %vm91_vm12, %v211_v7, %v210_v6 }
  0xdf   :  { %v215_v10 = vsel %vm90_vm13, %v419_v23, %v212_v8 }
  0xe0   :  { %v217_v11 = vmul.f32 %v215_v10, %v215_v10 }
  0xe2   :  { %v218_v12 = vmul.f32 -0.001358992, %v217_v11  ;;  %v225_v13 = vmul.f32 -0.00019511016, %v217_v11 }
  0xe4   :  { %v219_v15 = vadd.f32 0.041655596, %v218_v12  ;;  %v226_v16 = vadd.f32 0.008332121, %v225_v13 }
  0xe6   :  { %v220_v18 = vmul.f32 %v219_v15, %v217_v11  ;;  %v227_v19 = vmul.f32 %v226_v16, %v217_v11 }
  0xe8   :  { %v221_v20 = vadd.f32 -0.4999988, %v220_v18  ;;  %v228_v21 = vadd.f32 -0.16666654, %v227_v19 }
  0xea   :  { %v222_v24 = vmul.f32 %v221_v20, %v217_v11  ;;  %v229_v25 = vmul.f32 %v228_v21, %v217_v11 }
  0xec   :  { %v223_v26 = vadd.f32 1.0, %v222_v24  ;;  %v230_v27 = vadd.f32 1.0, %v229_v25 }
  0xee   :  { %v231_v29 = vmul.f32 %v230_v27, %v215_v10  ;;  %v240_v30 = vxor.u32 2147483648, %v223_v26 }
  0xf0   :  { %v237_v31 = vxor.u32 2147483648, %v231_v29  ;;  %v241_v36 = vsel %vm239_vm15, %v240_v30, %v231_v29 }
  0xf2   :  { %v238_v34 = vsel %vm236_vm14, %v223_v26, %v237_v31 }
  0xf3   :  { %v242_v37 = vsel %vm235_vm0, %v238_v34, %v241_v36 }
  0xf4   :  { %v243_v38 = vsel %vm232_vm1, nan, %v242_v37 }
  0xf5   :  { %244 = vst [vmem:[#allocation7] sm:$0x3] %v243_v38 }
  0xf6   :  { %255 = dma.vmem_to_hbm [thread:$0]  %s251_s3, 32, %s253_s29, [#allocation4]  }
  0xf7   :  { %366 = dma.done.wait [#allocation4], 32  }
  0xf8   :  { %367 = vsyncadd [#allocation4], 4294967264 }
  0xf9   :  { %260 = vsyncpa [#allocation3], 1 }
  0xfa   :  { %261 = vsyncpa [#allocation6], 1 }
  0xfb   :  { %262 = vsyncpa [#allocation4], 1 }

</bundles_post_ra>
